<compile_context>
chip_gen: v5e
topology: v5e:2x2
jax: 0.10.0
libtpu: 0.0.40
codegen_flags: <defaults>
</compile_context>

<pallas_src>
import functools

import jax
import jax.numpy as jnp
import numpy as np
from jax import lax
from jax.experimental import pallas as pl
from jax.experimental.pallas import tpu as pltpu


def _round_up(a, b):
    return -(-a // b) * b


def _tile_plan(tile_h, Wp, Mk):
    """Static per-tile sizes: (valid lanes, padded lanes, column-tile width, input rows)."""
    lanes = tile_h * Wp
    lanes_pad = _round_up(lanes, 128)
    if lanes_pad > 512:
        lanes_pad = _round_up(lanes_pad, 512)
        col_tile = 512
    else:
        col_tile = lanes_pad
    # Enough input rows so every tap slice (flat offset up to (Mk-1)*Wp + Mk-1) of every lane
    # (including the junk tail lanes) stays in-bounds of the flattened input tile.
    rows_in = (Mk - 1) + _round_up(Mk - 1 + lanes_pad, Wp) // Wp
    return lanes, lanes_pad, col_tile, rows_in


def _pick_tile_h(Hq, Wp, Mk, Cin_pad, CoutP_pad, KP, itemsize,
                 budget=20 * 1024 * 1024, max_lanes=4096):
    """Largest tile_h whose per-step VMEM footprint fits the budget (v7x-safe)."""
    best = 1
    for th in range(1, Hq + 1):
        lanes, lanes_pad, col_tile, rows_in = _tile_plan(th, Wp, Mk)
        vmem = (2 * Cin_pad * rows_in * Wp * itemsize                # input tile, double-buffered
                + (0 if Mk == 1 else 2 * KP * col_tile * itemsize)   # im2col scratch (2 slots)
                + 2 * CoutP_pad * lanes_pad * itemsize               # output tile, double-buffered
                + CoutP_pad * col_tile * 4                           # f32 accumulator transient
                + 2 * CoutP_pad * KP * itemsize)                     # resident weight
        if vmem > budget or lanes_pad > max_lanes:
            break
        best = th
    return best


def _vmem_limit_bytes():
    # Per-generation scoped-VMEM request: ~3/4 of physical, clamped to [32, 64] MiB
    # (v5e/v6e: 128 MiB physical -> 64 MiB; v7x: 64 MiB physical -> 48 MiB; fallback 48 MiB).
    try:
        cap = int(pltpu.get_tpu_info().vmem_capacity_bytes)
    except Exception:
        cap = 64 * 1024 * 1024
    return int(min(max(cap * 3 // 4, 32 * 1024 * 1024), 64 * 1024 * 1024))


def _convt_phase_kernel(x_ref, w_ref, b_ref, o_ref, *scratch,
                        Mk, Wp, Cin_pad, col_tile):
    # x_ref:   (1, 1, Cin_pad, rows_in*Wp)   flattened halo'd input row tile (lane-dense)
    # w_ref:   (CoutP_pad, KP)               phase-reorganized weight, KP = Mk*Mk*Cin_pad
    # b_ref:   (CoutP_pad, 1)                per-phase-channel bias (f32)
    # o_ref:   (1, 1, CoutP_pad, lanes_pad)  lane-dense output tile, lanes_pad % 128 == 0
    # scratch (Mk > 1 only): patch_ref (slots, KP, col_tile) im2col column tiles.
    lanes_pad = o_ref.shape[-1]
    n_chunks = lanes_pad // col_tile
    w = w_ref[...]
    b = b_ref[...]

    if Mk == 1:
        # Fast path (K <= s): the im2col patch IS the input -- no copies, no scratch.
        for j in range(n_chunks):
            base = j * col_tile
            acc = jnp.dot(w, x_ref[0, 0, :, base:base + col_tile],
                          preferred_element_type=jnp.float32)
            o_ref[0, 0, :, base:base + col_tile] = (
                jnp.maximum(acc + b, 0.0).astype(o_ref.dtype))
    else:
        patch_ref = scratch[0]
        n_slots = patch_ref.shape[0]
        for j in range(n_chunks):
            slot = j % n_slots                 # alternate slots: copies(j+1) can overlap MXU(j)
            base = j * col_tile
            for dh in range(Mk):
                for dw in range(Mk):
                    row = (dh * Mk + dw) * Cin_pad
                    off = dh * Wp + dw + base  # each tap = contiguous lane slice of the flat tile
                    patch_ref[slot, row:row + Cin_pad, :] = (
                        x_ref[0, 0, :, off:off + col_tile])
            acc = jnp.dot(w, patch_ref[slot], preferred_element_type=jnp.float32)
            o_ref[0, 0, :, base:base + col_tile] = (
                jnp.maximum(acc + b, 0.0).astype(o_ref.dtype))


def conv_transpose2d_block(x_nchw, w_torch, bias, *, stride, padding, tile_h=None):
    """ConvTranspose2dBlock forward (norm='none', activation='relu', pad_type='zero').

    x_nchw : (N, Cin, H, W)       PyTorch NCHW input
    w_torch: (Cin, Cout, K, K)    PyTorch ConvTranspose2d weight layout
    bias   : (Cout,)
    returns: (N, Cout, Ho, Wo)    NCHW output
    """
    N, Cin, H, W = x_nchw.shape
    Cin_w, Cout, KH, KW = w_torch.shape
    assert Cin == Cin_w and KH == KW
    K, s, p = KH, stride, padding
    assert 0 <= p <= K - 1   # TODO(synk): padding > kernel_size-1 would need extra output cropping

    Ho = (H - 1) * s - 2 * p + K
    Wo = (W - 1) * s - 2 * p + K

    dtype = x_nchw.dtype
    itemsize = jnp.dtype(dtype).itemsize
    sub = max(8, 8 * 4 // itemsize)          # sublane pack: 8 (f32), 16 (bf16)

    # --- sub-pixel (phase) decomposition bookkeeping (all static Python ints) ---
    Mk = -(-K // s)                          # taps per phase (zero-padded to a uniform count)
    q_min = -((s - 1 - p) // s)              # = ceil((p - s + 1) / s)  (>= 0)
    q_max_h = (Ho - 1 + p) // s
    q_max_w = (Wo - 1 + p) // s
    Hq = q_max_h - q_min + 1                 # stride-1 conv rows (all phases, pre-crop)
    Wq = q_max_w - q_min + 1
    pad_t = Mk - 1 - q_min
    pad_l = Mk - 1 - q_min
    Wp = Wq + Mk - 1                         # padded width (= W + pad_l + pad_r)
    pad_r = Wp - W - pad_l

    Cin_pad = _round_up(Cin, sub)
    CoutP = Cout * s * s
    CoutP_pad = _round_up(CoutP, sub)
    KP = Mk * Mk * Cin_pad

    # --- row tiling over Hq ---
    if tile_h is None:
        tile_h = _pick_tile_h(Hq, Wp, Mk, Cin_pad, CoutP_pad, KP, itemsize)
    tile_h = max(1, min(int(tile_h), Hq))
    T = -(-Hq // tile_h)
    lanes, lanes_pad, col_tile, rows_in = _tile_plan(tile_h, Wp, Mk)
    L_in = rows_in * Wp
    Hp_needed = (T - 1) * tile_h + rows_in
    pad_b = max(0, Hp_needed - H - pad_t)

    # --- input: halo pad + contiguous per-tile row windows (overlap duplicated in HBM so plain
    #     auto-pipelined BlockSpecs can be used).  One pass over the (small) input; channels
    #     zero-padded to the sublane pack.
    xpad = jnp.pad(x_nchw, ((0, 0), (0, Cin_pad - Cin), (pad_t, pad_b), (pad_l, pad_r)))
    row_idx = (np.arange(T)[:, None] * tile_h) + np.arange(rows_in)[None, :]   # (T, rows_in)
    x_tiles = xpad[:, :, row_idx, :]                              # (N, Cin_pad, T, rows_in, Wp)
    x_tiles = jnp.transpose(x_tiles, (0, 2, 1, 3, 4)).reshape(N, T, Cin_pad, L_in)

    # --- weight: gather per-phase taps -> (KP, CoutP), zero-pad, transpose for the kernel ---
    d = np.arange(Mk)
    r = np.arange(s)
    kpos = r[:, None] + s * (Mk - 1 - d)[None, :]      # (s, Mk): kernel index per (phase, tap)
    valid = kpos < K
    kclip = np.minimum(kpos, K - 1)
    # wg[ci, co, r, dh, t, dw] = W[ci, co, kpos[r, dh], kpos[t, dw]]  (0 where tap is padding)
    wg = w_torch[:, :, kclip[:, :, None, None], kclip[None, None, :, :]]
    mask = jnp.asarray(valid[:, :, None, None] & valid[None, None, :, :], wg.dtype)
    wg = wg * mask
    wg = jnp.pad(wg, ((0, Cin_pad - Cin),) + ((0, 0),) * 5)       # zero rows for padded channels
    wmat = jnp.transpose(wg, (3, 5, 0, 1, 2, 4)).reshape(KP, CoutP)
    wmat = jnp.pad(wmat, ((0, 0), (0, CoutP_pad - CoutP)))
    wmat_t = jnp.transpose(wmat).astype(dtype)                    # (CoutP_pad, KP), input dtype
    b_ph = jnp.pad(jnp.repeat(bias.astype(jnp.float32), s * s),
                   (0, CoutP_pad - CoutP)).reshape(CoutP_pad, 1)

    kernel = functools.partial(_convt_phase_kernel, Mk=Mk, Wp=Wp,
                               Cin_pad=Cin_pad, col_tile=col_tile)
    n_slots = 2 if lanes_pad > col_tile else 1
    z = pl.pallas_call(
        kernel,
        out_shape=jax.ShapeDtypeStruct((N, T, CoutP_pad, lanes_pad), dtype),
        grid=(N, T),
        in_specs=[
            pl.BlockSpec((1, 1, Cin_pad, L_in), lambda n, t: (n, t, 0, 0)),
            pl.BlockSpec((CoutP_pad, KP), lambda n, t: (0, 0)),
            pl.BlockSpec((CoutP_pad, 1), lambda n, t: (0, 0)),
        ],
        out_specs=pl.BlockSpec((1, 1, CoutP_pad, lanes_pad), lambda n, t: (n, t, 0, 0)),
        scratch_shapes=([] if Mk == 1
                        else [pltpu.VMEM((n_slots, KP, col_tile), dtype)]),
        compiler_params=pltpu.CompilerParams(
            dimension_semantics=("parallel", "parallel"),   # batch x row-tiles shard across TCs
            vmem_limit_bytes=_vmem_limit_bytes()),
    )(x_tiles, wmat_t, b_ph)

    # --- crop junk lanes / channels / rows, merge tiles, pixel shuffle, final crop ---
    # Invariant: the last (Mk-1) columns of each Hq row and the (lanes_pad - lanes) tail lanes
    # of each tile hold wrap-around / junk data by construction; they are discarded here.
    z = z[:, :, :CoutP, :lanes].reshape(N, T, CoutP, tile_h, Wp)
    z = jnp.transpose(z, (0, 2, 1, 3, 4)).reshape(N, CoutP, T * tile_h, Wp)[:, :, :Hq, :]
    z6 = z.reshape(N, Cout, s, s, Hq, Wp)                          # (n, co, r, t, qi, qj)
    y = jnp.transpose(z6, (0, 1, 4, 2, 5, 3)).reshape(N, Cout, Hq * s, Wp * s)
    off = p - q_min * s
    return y[:, :, off:off + Ho, off:off + Wo]


def _reference(x_nchw, w_torch, bias, *, stride, padding):
    """Independent XLA reference: ConvTranspose2d + bias + ReLU."""
    N, Cin, H, W = x_nchw.shape
    _, Cout, KH, KW = w_torch.shape
    x = jnp.transpose(x_nchw, (0, 2, 3, 1))
    w_k = jnp.transpose(w_torch[:, :, ::-1, ::-1], (2, 3, 0, 1))
    ph, pw = KH - 1 - padding, KW - 1 - padding
    y = lax.conv_general_dilated(
        x, w_k, window_strides=(1, 1),
        padding=[(ph, ph), (pw, pw)],
        lhs_dilation=(stride, stride), rhs_dilation=(1, 1),
        dimension_numbers=('NHWC', 'HWIO', 'NHWC'))
    y = jnp.maximum(y + bias[None, None, None, :], 0.0)
    return jnp.transpose(y, (0, 3, 1, 2))


def _check(N, Cin, H, W, Cout, K, stride, padding, seed, tile_h=None, tol=1e-4):
    key = jax.random.PRNGKey(seed)
    kx, kw, kb = jax.random.split(key, 3)
    x = jax.random.normal(kx, (N, Cin, H, W), jnp.float32)
    w = jax.random.normal(kw, (Cin, Cout, K, K), jnp.float32) * 0.1   # PyTorch weight layout
    b = jax.random.normal(kb, (Cout,), jnp.float32) * 0.1
    fwd = jax.jit(functools.partial(conv_transpose2d_block, stride=stride,
                                    padding=padding, tile_h=tile_h))
    y = jax.block_until_ready(fwd(x, w, b))
    y_ref = _reference(x, w, b, stride=stride, padding=padding)
    Ho = (H - 1) * stride - 2 * padding + K
    Wo = (W - 1) * stride - 2 * padding + K
    assert y.shape == (N, Cout, Ho, Wo), (y.shape, (N, Cout, Ho, Wo))
    max_err = float(jnp.max(jnp.abs(y - y_ref)))
    assert jnp.allclose(y, y_ref, rtol=tol, atol=tol), max_err


if __name__ == "__main__":
    # Primary small config: typical 2x upsampling block.
    _check(N=2, Cin=4, H=16, W=16, Cout=8, K=4, stride=2, padding=1, seed=0)
    # Forced multi-row-tile + multi-column-chunk path, with channel padding (Cin 5->8, Cout*s^2 20->24).
    _check(N=1, Cin=5, H=40, W=40, Cout=5, K=4, stride=2, padding=1, seed=1, tile_h=16)
    # Mk == 1 fast path (K <= s): no im2col scratch or tap copies.
    _check(N=2, Cin=4, H=12, W=12, Cout=4, K=2, stride=2, padding=0, seed=2)
    print("KERNEL_OK")
</pallas_src>

<mosaic_0001>
module attributes {stable_mosaic.version = 11 : i64} {
  func.func @_convt_phase_kernel(%arg0: i32, %arg1: i32, %arg2: memref<1x1x8x414xf32, #tpu.memory_space<vmem>>, %arg3: memref<32x32xf32, #tpu.memory_space<vmem>>, %arg4: memref<32x1xf32, #tpu.memory_space<vmem>>, %arg5: memref<1x1x32x384xf32, #tpu.memory_space<vmem>>, %arg6: memref<1x32x384xf32, #tpu.memory_space<vmem>>) attributes {dimension_semantics = [#tpu.dimension_semantics<parallel>, #tpu.dimension_semantics<parallel>], iteration_bounds = array<i64: 2, 1>, scalar_prefetch = 0 : i64, scratch_operands = 1 : i64, tpu.core_type = #tpu.core_type<tc>, window_params = [{transform_indices = @transform_0, window_bounds = array<i64: 1, 1, 8, 414>}, {pipeline_mode = #tpu.pipeline_mode<synchronous>, transform_indices = @transform_1, window_bounds = array<i64: 32, 32>}, {pipeline_mode = #tpu.pipeline_mode<synchronous>, transform_indices = @transform_2, window_bounds = array<i64: 32, 1>}, {transform_indices = @transform_3, window_bounds = array<i64: 1, 1, 32, 384>}]} {
    %c0 = arith.constant 0 : index
    %c0_0 = arith.constant 0 : index
    %0 = vector.load %arg3[%c0, %c0_0] : memref<32x32xf32, #tpu.memory_space<vmem>>, vector<32x32xf32>
    %c0_1 = arith.constant 0 : index
    %c0_2 = arith.constant 0 : index
    %1 = vector.load %arg4[%c0_1, %c0_2] : memref<32x1xf32, #tpu.memory_space<vmem>>, vector<32x1xf32>
    %c0_3 = arith.constant 0 : index
    %c0_4 = arith.constant 0 : index
    %c0_5 = arith.constant 0 : index
    %c0_6 = arith.constant 0 : index
    %2 = vector.load %arg2[%c0_3, %c0_4, %c0_5, %c0_6] : memref<1x1x8x414xf32, #tpu.memory_space<vmem>>, vector<1x1x8x384xf32>
    %3 = vector.shape_cast %2 : vector<1x1x8x384xf32> to vector<8x384xf32>
    %c0_7 = arith.constant 0 : index
    %c0_8 = arith.constant 0 : index
    %c0_9 = arith.constant 0 : index
    %4 = vector.load %arg6[%c0_7, %c0_8, %c0_9] : memref<1x32x384xf32, #tpu.memory_space<vmem>>, vector<1x8x384xf32>
    %5 = vector.shape_cast %4 : vector<1x8x384xf32> to vector<8x384xf32>
    %6 = vector.shape_cast %3 : vector<8x384xf32> to vector<1x8x384xf32>
    tpu.vector_store %arg6[%c0_7, %c0_8, %c0_9], %6 {strides = array<i32>} : memref<1x32x384xf32, #tpu.memory_space<vmem>>, vector<1x8x384xf32>,
    %c0_10 = arith.constant 0 : index
    %c0_11 = arith.constant 0 : index
    %c0_12 = arith.constant 0 : index
    %c1 = arith.constant 1 : index
    %7 = vector.load %arg2[%c0_10, %c0_11, %c0_12, %c1] : memref<1x1x8x414xf32, #tpu.memory_space<vmem>>, vector<1x1x8x384xf32>
    %8 = vector.shape_cast %7 : vector<1x1x8x384xf32> to vector<8x384xf32>
    %c0_13 = arith.constant 0 : index
    %c8 = arith.constant 8 : index
    %c0_14 = arith.constant 0 : index
    %9 = vector.load %arg6[%c0_13, %c8, %c0_14] : memref<1x32x384xf32, #tpu.memory_space<vmem>>, vector<1x8x384xf32>
    %10 = vector.shape_cast %9 : vector<1x8x384xf32> to vector<8x384xf32>
    %11 = vector.shape_cast %8 : vector<8x384xf32> to vector<1x8x384xf32>
    tpu.vector_store %arg6[%c0_13, %c8, %c0_14], %11 {strides = array<i32>} : memref<1x32x384xf32, #tpu.memory_space<vmem>>, vector<1x8x384xf32>,
    %c0_15 = arith.constant 0 : index
    %c0_16 = arith.constant 0 : index
    %c0_17 = arith.constant 0 : index
    %c18 = arith.constant 18 : index
    %12 = vector.load %arg2[%c0_15, %c0_16, %c0_17, %c18] : memref<1x1x8x414xf32, #tpu.memory_space<vmem>>, vector<1x1x8x384xf32>
    %13 = vector.shape_cast %12 : vector<1x1x8x384xf32> to vector<8x384xf32>
    %c0_18 = arith.constant 0 : index
    %c16 = arith.constant 16 : index
    %c0_19 = arith.constant 0 : index
    %14 = vector.load %arg6[%c0_18, %c16, %c0_19] : memref<1x32x384xf32, #tpu.memory_space<vmem>>, vector<1x8x384xf32>
    %15 = vector.shape_cast %14 : vector<1x8x384xf32> to vector<8x384xf32>
    %16 = vector.shape_cast %13 : vector<8x384xf32> to vector<1x8x384xf32>
    tpu.vector_store %arg6[%c0_18, %c16, %c0_19], %16 {strides = array<i32>} : memref<1x32x384xf32, #tpu.memory_space<vmem>>, vector<1x8x384xf32>,
    %c0_20 = arith.constant 0 : index
    %c0_21 = arith.constant 0 : index
    %c0_22 = arith.constant 0 : index
    %c19 = arith.constant 19 : index
    %17 = vector.load %arg2[%c0_20, %c0_21, %c0_22, %c19] : memref<1x1x8x414xf32, #tpu.memory_space<vmem>>, vector<1x1x8x384xf32>
    %18 = vector.shape_cast %17 : vector<1x1x8x384xf32> to vector<8x384xf32>
    %c0_23 = arith.constant 0 : index
    %c24 = arith.constant 24 : index
    %c0_24 = arith.constant 0 : index
    %19 = vector.load %arg6[%c0_23, %c24, %c0_24] : memref<1x32x384xf32, #tpu.memory_space<vmem>>, vector<1x8x384xf32>
    %20 = vector.shape_cast %19 : vector<1x8x384xf32> to vector<8x384xf32>
    %21 = vector.shape_cast %18 : vector<8x384xf32> to vector<1x8x384xf32>
    tpu.vector_store %arg6[%c0_23, %c24, %c0_24], %21 {strides = array<i32>} : memref<1x32x384xf32, #tpu.memory_space<vmem>>, vector<1x8x384xf32>,
    %c0_25 = arith.constant 0 : index
    %c0_26 = arith.constant 0 : index
    %c0_27 = arith.constant 0 : index
    %22 = vector.load %arg6[%c0_25, %c0_26, %c0_27] : memref<1x32x384xf32, #tpu.memory_space<vmem>>, vector<1x32x384xf32>
    %23 = vector.shape_cast %22 : vector<1x32x384xf32> to vector<32x384xf32>
    %cst = arith.constant dense<0.000000e+00> : vector<32x384xf32>
    %24 = tpu.matmul %0, %23, %cst {dimension_numbers = #tpu.dot_dimension_numbers<[1], [0], [0], [1], [0, 0, 1, 1], [], []>} : vector<32x32xf32>, vector<32x384xf32>, vector<32x384xf32> -> vector<32x384xf32>
    %25 = vector.broadcast %1 : vector<32x1xf32> to vector<32x384xf32>
    %26 = arith.addf %24, %25 : vector<32x384xf32>
    %cst_28 = arith.constant 0.000000e+00 : f32
    %27 = vector.broadcast %cst_28 : f32 to vector<32x384xf32>
    %28 = arith.maximumf %26, %27 : vector<32x384xf32>
    %c0_29 = arith.constant 0 : index
    %c0_30 = arith.constant 0 : index
    %c0_31 = arith.constant 0 : index
    %c0_32 = arith.constant 0 : index
    %29 = vector.load %arg5[%c0_29, %c0_30, %c0_31, %c0_32] : memref<1x1x32x384xf32, #tpu.memory_space<vmem>>, vector<1x1x32x384xf32>
    %30 = vector.shape_cast %29 : vector<1x1x32x384xf32> to vector<32x384xf32>
    %31 = vector.shape_cast %28 : vector<32x384xf32> to vector<1x1x32x384xf32>
    tpu.vector_store %arg5[%c0_29, %c0_30, %c0_31, %c0_32], %31 {strides = array<i32>} : memref<1x1x32x384xf32, #tpu.memory_space<vmem>>, vector<1x1x32x384xf32>,
    return
  }
  func.func @transform_0(%arg0: i32, %arg1: i32) -> (i32, i32, i32, i32) {
    %c0_i32 = arith.constant 0 : i32
    %c0_i32_0 = arith.constant 0 : i32
    %c0_i32_1 = arith.constant 0 : i32
    return %arg0, %arg1, %c0_i32, %c0_i32_0 : i32, i32, i32, i32
  }
  func.func @transform_1(%arg0: i32, %arg1: i32) -> (i32, i32) {
    %c0_i32 = arith.constant 0 : i32
    %c0_i32_0 = arith.constant 0 : i32
    %c0_i32_1 = arith.constant 0 : i32
    return %c0_i32, %c0_i32_0 : i32, i32
  }
  func.func @transform_2(%arg0: i32, %arg1: i32) -> (i32, i32) {
    %c0_i32 = arith.constant 0 : i32
    %c0_i32_0 = arith.constant 0 : i32
    %c0_i32_1 = arith.constant 0 : i32
    return %c0_i32, %c0_i32_0 : i32, i32
  }
  func.func @transform_3(%arg0: i32, %arg1: i32) -> (i32, i32, i32, i32) {
    %c0_i32 = arith.constant 0 : i32
    %c0_i32_0 = arith.constant 0 : i32
    %c0_i32_1 = arith.constant 0 : i32
    return %arg0, %arg1, %c0_i32, %c0_i32_0 : i32, i32, i32, i32
  }
}

</mosaic_0001>

<bundles_post_ra>
// kernel: conv_transpose2d_block.1
= control target key start
LH: loop header
LB: loop body
LE: loop exit
PB: predicated region body
PF: predicated region fallthrough
CT: control target
= control target key end

     0   :  { %s692_s12 = smov 0   ;;  %s694_s13 = smov 0   ;;  %s798_s0 = inlined_call_operand.vmem [shape: f32[2,1,8,414], index: 0, kind: input, shape index: {}]   ;;  %s799_s1 = inlined_call_operand.vmem [shape: f32[32,32], index: 1, kind: input, shape index: {}]   ;;  %s800_s2 = inlined_call_operand.vmem [shape: f32[32,1], index: 2, kind: input, shape index: {}]   ;;  %s801_s3 = inlined_call_operand.vmem [shape: f32[2,1,32,384], index: 3, kind: output, shape index: {}]  }
   0x1   :  { %s696_s14 = smov 0  }
   0x2 LB: > { %s25_s15 = sadd.s32 1, %s662_s13  ;;  %p551_p0 = scmp.ge.s32.totalorder %s666_s14, 1  ;;  %s666_s14 = sphi %s696_s14, %s13_s14   ;;  %s662_s13 = sphi %s694_s13, %s803_s13   ;;  %s658_s12 = sphi %s692_s12, %s802_s12  }
   0x3   : > { %p27_p1 = scmp.ge.s32.totalorder %s25_s15, 2  ;;  %p157_p2 = scmp.lt.s32.totalorder %s666_s14, 3 }
   0x5   : > { %s805_s15 = smov (%p27_p1, %s25_s15), 0  ;;  %p158_p3 = pnand %p551_p0, %p157_p2 }
   0x6   : > { %p189_p4 = scmp.lt.s32.totalorder (!%p158_p3), %s658_s12, 1  ;;  %s668_s20 = smov (!%p158_p3), 109  }
   0x7   : > { %161 = sbr.rel (%p158_p3) target bundleno = 306 (0x132), region = 32  ;;  %s669_s21 = smov (!%p158_p3), 110  }
   0x8   : > { %s670_s22 = smov (!%p158_p3), 127  }
   0xc   : > { %s807_s12 = smov (!%p189_p4, %s658_s12), 1  ;;  %v671_v7 = vmov 0   ;;  %vm289_vm0 = vcmask 891904   ;;  %vm263_vm1 = vcmask 900096   ;;  %vm237_vm2 = vcmask 1039360   ;;  %v211_v19 = vld [vmem:[%s800_s2] sm:$0xff] }
   0xd   : > { %s569_s16 = sshll.u32 %s807_s12, 5  ;;  %642 = vset.pattern.permute.xlu1 %v671_v7  ;;  %641 = vset.pattern.permute.xlu0 %v671_v7  ;;  %v212_v20 = vld [vmem:[%s800_s2 + $0x8] sm:$0xff]  ;;  %v213_v21 = vld [vmem:[%s800_s2 + $0x10] sm:$0xff]  ;;  %vm331_vm3 = vcmask 261120   ;;  %v207_v31 = vld [vmem:[%s799_s1] sm:$0xff] }
   0xe   : > { %s197_s19 = scalar_lea.vmem %s798_s0, %s569_s16  ;;  %643 = vset.pattern.permute.xlu2 %v671_v7  ;;  %v208_v25 = vld [vmem:[%s799_s1 + $0x8] sm:$0xff]  ;;  %v214_v36 = vld [vmem:[%s800_s2 + $0x18] sm:$0xff]  ;;  %v209_v40 = vld [vmem:[%s799_s1 + $0x10] sm:$0xff]  ;;  %s582_s16 = smul.u32 96, %s807_s12 }
   0xf   : > { %v273_v0 = vld [vmem:[%s197_s19] sm:$0xff]  ;;  %v716_v1 = vld [vmem:[%s197_s19 + $0x8] sm:$0xff]  ;;  %v719_v3 = vld [vmem:[%s197_s19 + $0x10] sm:$0xff] }
  0x10   : > { %v611_v2 = vpack.i.bf16 %v716_v1, %v273_v0  ;;  %v276_v4 = vld [vmem:[%s197_s19 + $0x18] sm:$0xff]  ;;  %s775_s19 = scalar_lea.vmem %s801_s3, %s582_s16 }
  0x11   : > { %v616_v5 = vpack.i.bf16 %v276_v4, %v719_v3  ;;  %v210_v41 = vld [vmem:[%s799_s1 + $0x18] sm:$0xff] }
  0x12   : > { %612 = vrot.lane.b32.xlu0 %v611_v2, %s668_s20  ;;  %622 = vrot.lane.b32.xlu1 %v611_v2, %s669_s21 }
  0x13   : > { %632 = vrot.lane.b32.xlu2 %v611_v2, %s670_s22 }
  0x1a   : > { %617 = vrot.lane.b32.xlu0 %v616_v5, %s668_s20  ;;  %627 = vrot.lane.b32.xlu1 %v616_v5, %s669_s21 }
  0x1b   : > { %637 = vrot.lane.b32.xlu2 %v616_v5, %s670_s22 }
  0x22   : > { %313 = vperm.xlu0 %641, %v211_v19   ;;  %318 = vperm.xlu1 %642, %v212_v20  }
  0x23   : > { %323 = vperm.xlu2 %643, %v213_v21  }
  0x2a   : > { %328 = vperm.xlu1 %642, %v214_v36  }
  0x6d   : > { %v633_v6 = vpop.permute.xlu2 %632 }
  0x6e   : > { %v635_v8 = vunpack.i.h.bf16 %v633_v6  ;;  %v634_v9 = vunpack.i.l.bf16 %v633_v6 }
  0x70   : > { %v238_v18 = vsel %vm237_vm2, %v634_v9, %v635_v8 }
  0x75   : > { %v638_v22 = vpop.permute.xlu2 %637 }
  0x76   : > { %v640_v30 = vunpack.i.h.bf16 %v638_v22  ;;  %v639_v32 = vunpack.i.l.bf16 %v638_v22 }
  0x78   : > { %v240_v38 = vsel %vm237_vm2, %v639_v32, %v640_v30  ;;  %v239_v39 = vsel %vm237_vm2, %v635_v8, %v639_v32 }
  0x7d   : > { %v324_v55 = vpop.permute.xlu2 %323 }
  0x84   : > { %v613_v10 = vpop.permute.xlu0 %612  ;;  %v623_v11 = vpop.permute.xlu1 %622 }
  0x85   : > { %v615_v12 = vunpack.i.h.bf16 %v613_v10  ;;  %v614_v13 = vunpack.i.l.bf16 %v613_v10  ;;  %v625_v14 = vunpack.i.h.bf16 %v623_v11  ;;  %v624_v15 = vunpack.i.l.bf16 %v623_v11 }
  0x87   : > { %v290_v16 = vsel %vm289_vm0, %v614_v13, %v615_v12  ;;  %v264_v17 = vsel %vm263_vm1, %v624_v15, %v625_v14 }
  0x88   : > { %356 = vmatpush.msra.mxu0 %v290_v16  ;;  %570 = vmatpush.msra.mxu3 %v290_v16 }
  0x8a   : > { %357 = vmatpush.msra.mxu0 %v264_v17  ;;  %571 = vmatpush.msra.mxu3 %v264_v17 }
  0x8c   : > { %v618_v23 = vpop.permute.xlu0 %617  ;;  %v628_v24 = vpop.permute.xlu1 %627  ;;  %358 = vmatpush.msra.mxu0 %v238_v18  ;;  %572 = vmatpush.msra.mxu3 %v238_v18 }
  0x8d   : > { %v620_v26 = vunpack.i.h.bf16 %v618_v23  ;;  %v619_v27 = vunpack.i.l.bf16 %v618_v23  ;;  %v630_v28 = vunpack.i.h.bf16 %v628_v24  ;;  %v629_v29 = vunpack.i.l.bf16 %v628_v24 }
  0x8e   : > { %573 = vmatpush.msra.mxu3 %v273_v0  ;;  %359 = vmatpush.msra.mxu0 %v273_v0 }
  0x8f   : > { %556 = vmatmul.msk.f32.vlgmr.msra.gmra.mxu3 %vm331_vm3, %v208_v25  ;;  %v291_v33 = vsel %vm289_vm0, %v615_v12, %v619_v27  ;;  %v292_v34 = vsel %vm289_vm0, %v619_v27, %v620_v26  ;;  %v266_v35 = vsel %vm263_vm1, %v629_v29, %v630_v28  ;;  %v265_v37 = vsel %vm263_vm1, %v625_v14, %v629_v29 }
  0x90   : > { %385 = vmatpush.msrb.mxu0 %v291_v33  ;;  %574 = vmatpush.msra.mxu1 %v291_v33 }
  0x91   : > { %578 = vmatpush.msra.mxu2 %v292_v34  ;;  %555 = vmatmul.msk.f32.vlgmr.msra.gmra.mxu0 %vm331_vm3, %v207_v31 }
  0x92   : > { %386 = vmatpush.msrb.mxu0 %v265_v37  ;;  %575 = vmatpush.msra.mxu1 %v265_v37 }
  0x93   : > { %579 = vmatpush.msra.mxu2 %v266_v35 }
  0x94   : > { %387 = vmatpush.msrb.mxu0 %v239_v39  ;;  %576 = vmatpush.msra.mxu1 %v239_v39  ;;  %v314_v42 = vpop.permute.xlu0 %313  ;;  %v319_v45 = vpop.permute.xlu1 %318 }
  0x95   : > { %580 = vmatpush.msra.mxu2 %v240_v38 }
  0x96   : > { %388 = vmatpush.msrb.mxu0 %v716_v1  ;;  %577 = vmatpush.msra.mxu1 %v716_v1 }
  0x97   : > { %581 = vmatpush.msra.mxu2 %v719_v3  ;;  %557 = vmatmul.msk.f32.gmra.mxu3 %vm331_vm3, %v209_v40 }
  0x98   : > { %560 = vmatmul.msk.f32.vlgmr.msra.gmra.mxu1 %vm331_vm3, %v208_v25  ;;  %414 = vmatpush.msra.mxu0 %v292_v34 }
  0x99   : > { %564 = vmatmul.msk.f32.vlgmr.msra.gmra.mxu2 %vm331_vm3, %v208_v25  ;;  %559 = vmatmul.msk.f32.vlgmr.msrb.gmra.mxu0 %vm331_vm3, %v207_v31 }
  0x9a   : > { %415 = vmatpush.msra.mxu0 %v266_v35 }
  0x9c   : > { %416 = vmatpush.msra.mxu0 %v240_v38 }
  0x9e   : > { %417 = vmatpush.msra.mxu0 %v719_v3  ;;  %v329_v3 = vpop.permute.xlu1 %328 }
  0x9f   : > { %558 = vmatmul.msk.f32.gmra.mxu3 %vm331_vm3, %v210_v41 }
  0xa0   : > { %561 = vmatmul.msk.f32.gmra.mxu1 %vm331_vm3, %v209_v40 }
  0xa1   : > { %565 = vmatmul.msk.f32.gmra.mxu2 %vm331_vm3, %v209_v40  ;;  %563 = vmatmul.msk.f32.vlgmr.msra.gmra.mxu0 %vm331_vm3, %v207_v31 }
  0xa8   : > { %562 = vmatmul.msk.f32.gmra.mxu1 %vm331_vm3, %v210_v41 }
  0xa9   : > { %566 = vmatmul.msk.f32.gmra.mxu2 %vm331_vm3, %v210_v41 }
 0x10e   : > { %v361_v43 = vpop.f32.mrf.mxu0 }
 0x10f   : > { %v362_v44 = vadd.f32 %v361_v43, %v314_v42 }
 0x111   : > { %v431_v46 = vmax.f32 %v362_v44, 0.0 }
 0x112   : > { %v364_v47 = vpop.f32.mrf.mxu3 }
 0x113   : > { %v365_v48 = vadd.f32 %v364_v47, %v319_v45  ;;  %443 = vst [vmem:[%s775_s19] sm:$0xff] %v431_v46 }
 0x115   : > { %v393_v49 = vpop.f32.mrf.mxu1  ;;  %v434_v50 = vmax.f32 %v365_v48, 0.0 }
 0x116   : > { %v394_v51 = vadd.f32 %v393_v49, %v319_v45  ;;  %v390_v52 = vpop.f32.mrf.mxu0 }
 0x117   : > { %446 = vst [vmem:[%s775_s19 + $0x18] sm:$0xff] %v434_v50  ;;  %v391_v53 = vadd.f32 %v390_v52, %v314_v42 }
 0x118   : > { %v435_v54 = vmax.f32 %v394_v51, 0.0 }
 0x119   : > { %v432_v56 = vmax.f32 %v391_v53, 0.0 }
 0x11a   : > { %447 = vst [vmem:[%s775_s19 + $0x20] sm:$0xff] %v435_v54  ;;  %v367_v57 = vpop.f32.mrf.mxu3 }
 0x11b   : > { %v368_v58 = vadd.f32 %v367_v57, %v324_v55  ;;  %444 = vst [vmem:[%s775_s19 + $0x8] sm:$0xff] %v432_v56 }
 0x11c   : > { %v422_v59 = vpop.f32.mrf.mxu2 }
 0x11d   : > { %v423_v60 = vadd.f32 %v422_v59, %v319_v45  ;;  %v396_v61 = vpop.f32.mrf.mxu1  ;;  %v437_v62 = vmax.f32 %v368_v58, 0.0 }
 0x11e   : > { %v397_v63 = vadd.f32 %v396_v61, %v324_v55  ;;  %v419_v0 = vpop.f32.mrf.mxu0 }
 0x11f   : > { %v436_v1 = vmax.f32 %v423_v60, 0.0  ;;  %449 = vst [vmem:[%s775_s19 + $0x30] sm:$0xff] %v437_v62  ;;  %v420_v2 = vadd.f32 %v419_v0, %v314_v42 }
 0x120   : > { %v438_v4 = vmax.f32 %v397_v63, 0.0 }
 0x121   : > { %448 = vst [vmem:[%s775_s19 + $0x28] sm:$0xff] %v436_v1  ;;  %v433_v5 = vmax.f32 %v420_v2, 0.0 }
 0x122   : > { %450 = vst [vmem:[%s775_s19 + $0x38] sm:$0xff] %v438_v4  ;;  %v370_v6 = vpop.f32.mrf.mxu3 }
 0x123   : > { %v371_v7 = vadd.f32 %v370_v6, %v329_v3  ;;  %445 = vst [vmem:[%s775_s19 + $0x10] sm:$0xff] %v433_v5 }
 0x124   : > { %v425_v8 = vpop.f32.mrf.mxu2 }
 0x125   : > { %v440_v9 = vmax.f32 %v371_v7, 0.0  ;;  %v426_v10 = vadd.f32 %v425_v8, %v324_v55  ;;  %v399_v11 = vpop.f32.mrf.mxu1 }
 0x126   : > { %v400_v12 = vadd.f32 %v399_v11, %v329_v3 }
 0x127   : > { %452 = vst [vmem:[%s775_s19 + $0x48] sm:$0xff] %v440_v9  ;;  %v439_v13 = vmax.f32 %v426_v10, 0.0 }
 0x128   : > { %v441_v14 = vmax.f32 %v400_v12, 0.0 }
 0x129   : > { %451 = vst [vmem:[%s775_s19 + $0x40] sm:$0xff] %v439_v13 }
 0x12a   : > { %453 = vst [vmem:[%s775_s19 + $0x50] sm:$0xff] %v441_v14 }
 0x12c   : > { %v428_v15 = vpop.f32.mrf.mxu2 }
 0x12d   : > { %v429_v16 = vadd.f32 %v428_v15, %v329_v3 }
 0x12f   : > { %v442_v17 = vmax.f32 %v429_v16, 0.0 }
 0x131   : > { %454 = vst [vmem:[%s775_s19 + $0x58] sm:$0xff] %v442_v17 }
 0x132 PF: > { %s13_s14 = sadd.s32 1, %s666_s14   ;;  %s802_s12 = smov %s662_s13 }
 0x133   : > { %p10_p5 = scmp.ge.s32.totalorder %s13_s14, 4   ;;  %s803_s13 = smov %s805_s15 }
 0x135   :  { %12 = sbr.rel (!%p10_p5) target bundleno = 2 (0x2), region = 62 }

</bundles_post_ra>
